<compile_context>
chip_gen: v7x
topology: tpu7x:2x2x1
jax: 0.10.0
libtpu: 0.0.40
codegen_flags: <defaults>
</compile_context>

<pallas_src>
import math

import jax
import jax.numpy as jnp
from jax.experimental import pallas as pl
from jax.experimental.pallas import tpu as pltpu


# ----------------------------------------------------------------------------
# Buffer construction (deterministic, matches nn.Module.__init__)
# ----------------------------------------------------------------------------
def build_pe(features_dimensionality: int, num_of_beats: int) -> jnp.ndarray:
    """Builds the (F, B) positional-encoding buffer exactly like the module."""
    F = features_dimensionality
    B = num_of_beats
    assert B % 2 == 0, "num_of_beats must be even (same constraint as the PyTorch module)"
    position = jnp.arange(0, F, dtype=jnp.float32)[:, None]                  # (F, 1)
    div_term = jnp.exp(
        jnp.arange(0, B, 2, dtype=jnp.float32) * (-math.log(10000.0) / B)
    )                                                                         # (B//2,)
    pe = jnp.zeros((F, B), dtype=jnp.float32)
    pe = pe.at[:, 0::2].set(jnp.sin(position * div_term))
    pe = pe.at[:, 1::2].set(jnp.cos(position * div_term))
    # PyTorch does unsqueeze(0).transpose(0,1) -> (F,1,B); forward squeezes it
    # back out, so the effective buffer is just (F, B).
    return pe


# ----------------------------------------------------------------------------
# Kernel: broadcast add of the (1, td) pe row over a (tm, td) x tile.
# ----------------------------------------------------------------------------
def _pe_add_kernel(x_ref, pe_ref, o_ref):
    o_ref[...] = x_ref[...] + pe_ref[...]


# ----------------------------------------------------------------------------
# Tiling heuristics
# ----------------------------------------------------------------------------
def _sublane_multiple(dtype) -> int:
    """Sublane packing granularity: 8 (f32), 16 (bf16), 32 (int8/fp8)."""
    itemsize = jnp.dtype(dtype).itemsize
    return max(8, 32 // max(1, itemsize))


def _choose_tiles(num_rows: int, num_lanes: int, dtype,
                  target_tile_bytes: int = 4 * 1024 * 1024):
    """Pick (tm, td): ~target-byte blocks, dtype-aware sublane rounding,
    lane tiling for very wide rows, and a 2-way row balance for v7x megacore."""
    itemsize = jnp.dtype(dtype).itemsize
    sub = _sublane_multiple(dtype)
    total_bytes = num_rows * num_lanes * itemsize
    row_bytes = num_lanes * itemsize

    # --- lane tile ---------------------------------------------------------
    if num_lanes <= 128 or sub * row_bytes <= target_tile_bytes:
        td = num_lanes                      # full-extent (no 128-multiple needed)
    else:
        # Rows are so wide that even a minimal (sub, D) block exceeds the
        # budget: tile lanes in multiple-of-128 chunks (~1-2k lanes).
        lanes = (target_tile_bytes // (sub * itemsize)) // 128 * 128
        td = int(min(max(128, lanes), 2048))

    # --- row tile ----------------------------------------------------------
    block_row_bytes = td * itemsize
    tm_raw = max(1, target_tile_bytes // max(1, block_row_bytes))
    lane_steps = -(-num_lanes // td)

    if tm_raw >= num_rows:
        tm = num_rows                       # full extent
        # v7x: avoid a grid with a single step for a non-trivial problem so the
        # second TensorCore is not idle under "parallel" semantics.
        if lane_steps == 1 and total_bytes > (4 << 20) and num_rows >= 2 * sub:
            half = -(-num_rows // 2)
            half = -(-half // sub) * sub    # round up to sublane multiple
            tm = min(num_rows, max(sub, half))
    else:
        tm = max(sub, (tm_raw // sub) * sub)
        # Balance the split so both TensorCores get comparable work.
        half = -(-num_rows // 2)
        half = -(-half // sub) * sub
        tm = min(tm, max(sub, half))
        tm = min(tm, num_rows)

    return int(tm), int(td)


# ----------------------------------------------------------------------------
# Wrapper
# ----------------------------------------------------------------------------
def ecg_positional_encoding(x: jnp.ndarray, pe: jnp.ndarray,
                            *, alias_input: bool = False) -> jnp.ndarray:
    """Forward pass of ECGPositionalEncoding (eval mode: dropout = identity).

    Set alias_input=True only when the caller donates x (e.g. via
    jit(..., donate_argnums)); it removes the extra output allocation.
    """
    # TODO(synk): dropout is identity (eval-mode semantics); training-mode
    # stochastic dropout would need pltpu.prng_seed/prng_random_bits plumbing.
    N, C, F, B = x.shape
    assert pe.shape == (F, B)

    # Deliberate deviation (documented): pe is cast to x.dtype before the add
    # to avoid in-kernel dtype promotion; PyTorch keeps the buffer f32 and
    # type-promotes the add for mixed dtypes.
    pe = pe.astype(x.dtype)

    # Lane-dense, contiguous layout. For a default row-major x these reshapes
    # are pure bitcasts (no HBM traffic); if x can arrive strided upstream,
    # collapse (N, C) via the grid instead.
    R = N * C
    D = F * B
    x2 = x.reshape(R, D)
    pe2 = pe.reshape(1, D)

    itemsize = jnp.dtype(x.dtype).itemsize
    tm, td = _choose_tiles(R, D, x.dtype)
    grid = (pl.cdiv(R, tm), pl.cdiv(D, td))

    extra_kwargs = {}
    if alias_input:
        extra_kwargs["input_output_aliases"] = {0: 0}

    out2 = pl.pallas_call(
        _pe_add_kernel,
        out_shape=jax.ShapeDtypeStruct((R, D), x.dtype),
        grid_spec=pltpu.PrefetchScalarGridSpec(
            num_scalar_prefetch=0,
            grid=grid,
            in_specs=[
                pl.BlockSpec((tm, td), lambda i, j: (i, j)),
                pl.BlockSpec((1, td), lambda i, j: (0, j)),   # VMEM-resident pe row
            ],
            out_specs=pl.BlockSpec((tm, td), lambda i, j: (i, j)),
        ),
        compiler_params=pltpu.CompilerParams(
            dimension_semantics=("parallel", "parallel"),
            vmem_limit_bytes=32 * 1024 * 1024,
        ),
        cost_estimate=pl.CostEstimate(
            flops=R * D,
            transcendentals=0,
            bytes_accessed=2 * R * D * itemsize + D * itemsize,
        ),
        **extra_kwargs,
    )(x2, pe2)

    return out2.reshape(N, C, F, B)


# ----------------------------------------------------------------------------
# Demo / self-test
# ----------------------------------------------------------------------------
if __name__ == "__main__":
    key = jax.random.PRNGKey(0)

    # --- small f32 case (matches module forward: x is (N, C, F, B)) --------
    batch, channels = 2, 4
    features_dimensionality = 16   # F
    num_of_beats = 16              # B (even, as the module formula requires)

    x = jax.random.normal(
        key, (batch, channels, features_dimensionality, num_of_beats),
        dtype=jnp.float32,
    )
    pe = build_pe(features_dimensionality, num_of_beats)

    out = ecg_positional_encoding(x, pe)
    out = jax.block_until_ready(out)

    ref = x + pe[None, None, :, :]
    assert out.shape == x.shape
    assert jnp.allclose(out, ref, atol=1e-6), "f32 mismatch vs reference"

    # --- bf16 case (exercises dtype-aware sublane rounding) ----------------
    k2 = jax.random.PRNGKey(1)
    F2, B2 = 100, 60
    x_bf16 = jax.random.normal(k2, (4, 8, F2, B2), dtype=jnp.float32).astype(jnp.bfloat16)
    pe2 = build_pe(F2, B2)

    out_bf16 = jax.block_until_ready(ecg_positional_encoding(x_bf16, pe2))
    ref_bf16 = x_bf16 + pe2.astype(jnp.bfloat16)[None, None, :, :]
    assert out_bf16.shape == x_bf16.shape
    assert jnp.allclose(out_bf16.astype(jnp.float32),
                        ref_bf16.astype(jnp.float32), atol=1e-2), "bf16 mismatch"

    print("KERNEL_OK")
</pallas_src>

<mosaic_0001>
module attributes {stable_mosaic.version = 11 : i64} {
  func.func @_pe_add_kernel(%arg0: i32, %arg1: i32, %arg2: memref<8x256xf32, #tpu.memory_space<vmem>>, %arg3: memref<1x256xf32, #tpu.memory_space<vmem>>, %arg4: memref<8x256xf32, #tpu.memory_space<vmem>>) attributes {dimension_semantics = [#tpu.dimension_semantics<parallel>, #tpu.dimension_semantics<parallel>], iteration_bounds = array<i64: 1, 1>, scalar_prefetch = 0 : i64, scratch_operands = 0 : i64, tpu.core_type = #tpu.core_type<tc>, window_params = [{transform_indices = @transform_0, window_bounds = array<i64: 8, 256>}, {transform_indices = @transform_1, window_bounds = array<i64: 1, 256>}, {transform_indices = @transform_2, window_bounds = array<i64: 8, 256>}]} {
    %c0 = arith.constant 0 : index
    %c0_0 = arith.constant 0 : index
    %0 = vector.load %arg2[%c0, %c0_0] : memref<8x256xf32, #tpu.memory_space<vmem>>, vector<8x256xf32>
    %c0_1 = arith.constant 0 : index
    %c0_2 = arith.constant 0 : index
    %1 = vector.load %arg3[%c0_1, %c0_2] : memref<1x256xf32, #tpu.memory_space<vmem>>, vector<1x256xf32>
    %2 = vector.broadcast %1 : vector<1x256xf32> to vector<8x256xf32>
    %3 = arith.addf %0, %2 : vector<8x256xf32>
    %c0_3 = arith.constant 0 : index
    %c0_4 = arith.constant 0 : index
    %4 = vector.load %arg4[%c0_3, %c0_4] : memref<8x256xf32, #tpu.memory_space<vmem>>, vector<8x256xf32>
    tpu.vector_store %arg4[%c0_3, %c0_4], %3 {strides = array<i32>} : memref<8x256xf32, #tpu.memory_space<vmem>>, vector<8x256xf32>,
    return
  }
  func.func @transform_0(%arg0: i32, %arg1: i32) -> (i32, i32) {
    %c0_i32 = arith.constant 0 : i32
    return %arg0, %arg1 : i32, i32
  }
  func.func @transform_1(%arg0: i32, %arg1: i32) -> (i32, i32) {
    %c0_i32 = arith.constant 0 : i32
    %c0_i32_0 = arith.constant 0 : i32
    return %c0_i32, %arg1 : i32, i32
  }
  func.func @transform_2(%arg0: i32, %arg1: i32) -> (i32, i32) {
    %c0_i32 = arith.constant 0 : i32
    return %arg0, %arg1 : i32, i32
  }
}

</mosaic_0001>

<bundles_post_ra>
// kernel: tpu_custom_call.1
= control target key start
LH: loop header
LB: loop body
LE: loop exit
PB: predicated region body
PF: predicated region fallthrough
CT: control target
= control target key end

     0   :  { %7 = vsyncpa [#allocation3], 0  ;;  %s151_s0 = inlined_call_operand.hbm [shape: f32[8,256], index: 0, kind: input, shape index: {}]   ;;  %s152_s1 = inlined_call_operand.vmem [shape: f32[1,256], index: 1, kind: input, shape index: {}]   ;;  %s153_s2 = inlined_call_operand.hbm [shape: f32[8,256], index: 2, kind: output, shape index: {}]  }
   0x1   :  { %8 = vsyncpa [#allocation4], 0  ;;  %s107_s9 = smov [#allocation2]   ;;  %s59_s13 = scalar_lea.hbm %s151_s0, 256 }
   0x2   :  { %s15_s10 = sshll.u32 %s107_s9, 4  ;;  %p60_p0 = scmp.ne.s32.totalorder %s151_s0, %s59_s13  ;;  %s16_s10 = int_to_ptr.vmem [resolvable:$true] %s15_s10 }
   0x3   :  { %p63_p1 = scmp.lt.u32.totalorder %s59_s13, %s151_s0 }
   0x5   :  { %p65_p2 = pnand %p63_p1, %p60_p0 }
   0x7   :  { %68 = shalt.err (!%p65_p2)
}
   0x8   :  { %s69_s18 = scalar_lea.vmem %s16_s10, 256  ;;  %p74_p4 = scmp.lt.s32.totalorder %s16_s10, %s16_s10 }
   0x9   :  { %p70_p3 = scmp.ne.s32.totalorder %s16_s10, %s69_s18  ;;  %p75_p5 = scmp.lt.s32.totalorder %s69_s18, %s69_s18 }
   0xb   :  { %p76_p6 = por %p75_p5, %p74_p4 }
   0xd   :  { %p77_p7 = pnand %p76_p6, %p70_p3 }
   0xf   :  { %80 = shalt.err (!%p77_p7)
}
  0x10   :  { %18 = dma.hbm_to_vmem [thread:$0]  %s151_s0, 256, %s16_s10, [#allocation3]  }
  0x11   :  { %103 = dma.done.wait [#allocation3], 256  }
  0x12   :  { %104 = vsyncadd [#allocation3], 4294967040  ;;  %v28_v0 = vlaneseq  ;;  %v24_v4 = vld [vmem:[#allocation2] sm:$0xff]  ;;  %v25_v6 = vld [vmem:[#allocation2 + $0x8] sm:$0xff]  ;;  %s108_s23 = smov [#allocation5]  }
  0x13   :  { %v26_v5 = vld [vmem:[%s152_s1] sm:$0x3]  ;;  %s48_s24 = sshll.u32 %s108_s23, 4  ;;  %s49_s24 = int_to_ptr.vmem [resolvable:$true] %s48_s24 }
  0x14   :  { %v29_v1 = vshrl.u32 %v28_v0, 7  ;;  %s81_s0 = scalar_lea.vmem %s49_s24, 256  ;;  %p86_p9 = scmp.lt.s32.totalorder %s49_s24, %s49_s24 }
  0x15   :  { %p82_p8 = scmp.ne.s32.totalorder %s49_s24, %s81_s0  ;;  %p87_p10 = scmp.lt.s32.totalorder %s81_s0, %s81_s0 }
  0x16   :  { %v30_v2 = vsub.s32 0, %v29_v1  ;;  %v34_v3 = vsub.s32 1, %v29_v1 }
  0x17   :  { %p88_p11 = por %p87_p10, %p86_p9 }
  0x18   :  { %v31_v7 = vrot.slane %v26_v5, %v30_v2  ;;  %v35_v8 = vrot.slane %v26_v5, %v34_v3 }
  0x19   :  { %p89_p12 = pnand %p88_p11, %p82_p8 }
  0x1a   :  { %v38_v9 = vadd.f32 %v31_v7, %v24_v4  ;;  %v39_v10 = vadd.f32 %v35_v8, %v25_v6 }
  0x1c   :  { %40 = vst [vmem:[#allocation5] sm:$0xff] %v38_v9  ;;  %41 = vst [vmem:[#allocation5 + $0x8] sm:$0xff] %v39_v10 }
  0x1d   :  { %92 = shalt.err (!%p89_p12)
}
  0x1e   :  { %s93_s1 = scalar_lea.hbm %s153_s2, 256 }
  0x1f   :  { %p94_p13 = scmp.ne.s32.totalorder %s153_s2, %s93_s1  ;;  %p97_p0 = scmp.lt.u32.totalorder %s93_s1, %s153_s2 }
  0x21   :  { %p99_p1 = pnand %p97_p0, %p94_p13 }
  0x23   :  { %102 = shalt.err (!%p99_p1)
}
  0x24   :  { %51 = dma.vmem_to_hbm [thread:$0]  %s49_s24, 256, %s153_s2, [#allocation4]  }
  0x25   :  { %105 = dma.done.wait [#allocation4], 256  }
  0x26   :  { %106 = vsyncadd [#allocation4], 4294967040 }
  0x27   :  { %55 = vsyncpa [#allocation3], 1 }
  0x28   :  { %56 = vsyncpa [#allocation4], 1 }

</bundles_post_ra>
